<compile_context>
chip_gen: v7x
topology: tpu7x:2x2x1
jax: 0.10.0
libtpu: 0.0.40
codegen_flags: <defaults>
</compile_context>

<pallas_src>
import math
import functools

import jax
import jax.numpy as jnp
from jax import lax
from jax.experimental import pallas as pl
from jax.experimental.pallas import tpu as pltpu

LANE = 128


def _round_up(n, m):
    return (n + m - 1) // m * m


def ffn_kernel(T, K, pad, Cinp, Fp, len_ref, x_ref, w1_ref, b1_ref, w2_ref,
               b2_ref, out_ref):
    """One batch element per grid step (channels-last, channels padded to 128).

    len_ref: [B]              int32 SMEM (scalar prefetch) valid frame counts
    x_ref  : [1, T+4p, Cinp]  bf16, time zero-padded by 2*pad on each side
    w1_ref : [K*Cinp, Fp]     bf16  (tap-major rows: kk*Cinp + c)
    b1_ref : [1, Fp]          f32
    w2_ref : [K*Fp, Coutp]    bf16
    b2_ref : [1, Coutp]       f32
    out_ref: [1, T, Coutp]    f32
    """
    Tp = T + 4 * pad
    Text = T + 2 * pad                 # extended rows feeding conv_2's zero pad
    length = len_ref[pl.program_id(0)]

    x = x_ref[0]                       # [Tp, Cinp] bf16 (stays bf16 throughout)

    # x * x_mask: padded-slab row j holds original frame j - 2*pad.
    row = lax.broadcasted_iota(jnp.int32, (Tp, 1), 0)
    valid_in = (row >= 2 * pad) & (row < length + 2 * pad)
    xm = jnp.where(valid_in, x, jnp.zeros_like(x))             # bf16, masked

    # ---- conv_1: K accumulated MXU matmuls (no concat materialization) ----
    # Extended output row e (original frame e - pad) reads xm rows e .. e+K-1.
    # NOTE: kk = 1, 2 slices are sublane-misaligned; if bundle dumps show
    # retiling copies, move the shift onto pltpu.roll (XLU slot has slack here).
    acc1 = jnp.dot(xm[0:Text, :], w1_ref[0:Cinp, :],
                   preferred_element_type=jnp.float32)
    for kk in range(1, K):
        acc1 = acc1 + jnp.dot(xm[kk:kk + Text, :],
                              w1_ref[kk * Cinp:(kk + 1) * Cinp, :],
                              preferred_element_type=jnp.float32)
    h = acc1 + b1_ref[...]                                     # [Text, Fp] f32

    # relu + dropout(p=0) + (h * x_mask), fused with the f32 -> bf16 cast.
    # The mask is zero on the extension rows, which reproduces conv_2's zero
    # time padding exactly.
    # TODO(synk): dropout with p_dropout > 0 (training) would need pltpu.prng_*.
    erow = lax.broadcasted_iota(jnp.int32, (Text, 1), 0)
    valid_ext = (erow >= pad) & (erow < length + pad)
    hm = jnp.where(valid_ext, jnp.maximum(h, 0.0), 0.0).astype(jnp.bfloat16)

    # ---- conv_2: K accumulated MXU matmuls ----
    acc2 = jnp.dot(hm[0:T, :], w2_ref[0:Fp, :],
                   preferred_element_type=jnp.float32)
    for kk in range(1, K):
        acc2 = acc2 + jnp.dot(hm[kk:kk + T, :],
                              w2_ref[kk * Fp:(kk + 1) * Fp, :],
                              preferred_element_type=jnp.float32)
    y = acc2 + b2_ref[...]                                     # [T, Coutp] f32

    orow = lax.broadcasted_iota(jnp.int32, (T, 1), 0)
    out_ref[0] = jnp.where(orow < length, y, 0.0)              # final * x_mask


def ffn_forward(x_nct, x_mask, w1, b1, w2, b2):
    """Matches torch FFN.forward.

    x_nct : [B, C_in, T] f32       x_mask: [B, 1, T] binary prefix mask
    w1    : [K, C_in, F] f32       b1: [F]
    w2    : [K, F, C_out] f32      b2: [C_out]
    Returns [B, C_out, T] f32.

    NOTE: x_mask is assumed to be a 0/1 sequence-length (prefix) mask, which is
    how pflow constructs it (sequence_mask); the kernel rebuilds it from a
    per-batch length scalar instead of DMA-ing a mask block every grid step.
    """
    B, Cin, T = x_nct.shape
    K, _, F = w1.shape
    Cout = w2.shape[2]
    assert K % 2 == 1, "kernel_size must be odd (padding = kernel_size // 2)"
    pad = K // 2
    Tp = T + 4 * pad

    # lane-dense channel padding: unmasked full-lane loads/stores, MXU-friendly.
    Cinp = _round_up(Cin, LANE)
    Fp = _round_up(F, LANE)
    Coutp = _round_up(Cout, LANE)

    lengths = jnp.sum(x_mask, axis=(1, 2)).astype(jnp.int32)           # [B]

    # channels-last bf16; zero-pad time by 2*pad per side (every conv tap
    # becomes a static in-kernel slice) and channels up to the lane multiple.
    # TODO(synk): if the surrounding model can stay channels-last [B, T, C],
    # drop this transpose and the final one (each is a full HBM round trip).
    x = jnp.transpose(x_nct, (0, 2, 1)).astype(jnp.bfloat16)           # [B,T,Cin]
    x_p = jnp.pad(x, ((0, 0), (2 * pad, 2 * pad), (0, Cinp - Cin)))    # [B,Tp,Cinp]

    # conv weights in matmul layout, zero-padded to lane multiples, bf16.
    w1p = jnp.pad(w1, ((0, 0), (0, Cinp - Cin), (0, Fp - F))
                  ).astype(jnp.bfloat16).reshape(K * Cinp, Fp)
    w2p = jnp.pad(w2, ((0, 0), (0, Fp - F), (0, Coutp - Cout))
                  ).astype(jnp.bfloat16).reshape(K * Fp, Coutp)
    b1p = jnp.pad(b1, (0, Fp - F)).astype(jnp.float32).reshape(1, Fp)
    b2p = jnp.pad(b2, (0, Coutp - Cout)).astype(jnp.float32).reshape(1, Coutp)

    # VMEM budget ≈ 3/4 of physical: ~96 MiB on v5e/v6e, ~48 MiB on v7x.
    try:
        cap = getattr(pltpu.get_tpu_info(), "vmem_capacity_bytes",
                      128 * 1024 * 1024)
    except Exception:
        cap = 128 * 1024 * 1024
    vmem_limit = int(min(cap * 3 // 4, 100 * 1024 * 1024))

    kern = functools.partial(ffn_kernel, T, K, pad, Cinp, Fp)
    # TODO(synk): on v7x with production-length T, tile the time axis with a
    # 2*pad halo (grid=(B, ceil(T/tT))) and single-buffer the grid-invariant
    # weight/bias specs (pipeline_mode=pl.Buffered(1)) to stay inside 64 MiB.
    out = pl.pallas_call(
        kern,
        out_shape=jax.ShapeDtypeStruct((B, T, Coutp), jnp.float32),
        grid_spec=pltpu.PrefetchScalarGridSpec(
            num_scalar_prefetch=1,
            grid=(B,),
            in_specs=[
                pl.BlockSpec((1, Tp, Cinp), lambda b, lens: (b, 0, 0)),
                pl.BlockSpec((K * Cinp, Fp), lambda b, lens: (0, 0)),
                pl.BlockSpec((1, Fp), lambda b, lens: (0, 0)),
                pl.BlockSpec((K * Fp, Coutp), lambda b, lens: (0, 0)),
                pl.BlockSpec((1, Coutp), lambda b, lens: (0, 0)),
            ],
            out_specs=pl.BlockSpec((1, T, Coutp), lambda b, lens: (b, 0, 0)),
        ),
        compiler_params=pltpu.CompilerParams(
            dimension_semantics=("parallel",),
            vmem_limit_bytes=vmem_limit,
        ),
    )(lengths, x_p, w1p, b1p, w2p, b2p)

    # drop channel padding, back to [B, C_out, T]
    return jnp.transpose(out[:, :, :Cout], (0, 2, 1))


def ffn_reference(x_nct, x_mask, w1, b1, w2, b2):
    """Pure-XLA reference with torch Conv1d semantics (f32)."""
    K = w1.shape[0]
    pad = K // 2

    def conv(inp, w_kio, b):
        w_oik = jnp.transpose(w_kio, (2, 1, 0))          # [O, I, K] (torch layout)
        y = lax.conv_general_dilated(inp, w_oik, (1,), [(pad, pad)],
                                     dimension_numbers=('NCH', 'OIH', 'NCH'))
        return y + b[None, :, None]

    h = conv(x_nct * x_mask, w1, b1)
    h = jnp.maximum(h, 0.0)
    y = conv(h * x_mask, w2, b2)
    return y * x_mask


if __name__ == "__main__":
    B, Cin, Fc, Cout, T, K = 2, 32, 64, 32, 16, 3

    key = jax.random.PRNGKey(0)
    kx, k1, k2, k3, k4 = jax.random.split(key, 5)
    x = jax.random.normal(kx, (B, Cin, T), jnp.float32)
    lengths = jnp.array([T, 11], jnp.int32)
    x_mask = (jnp.arange(T)[None, :] < lengths[:, None]).astype(jnp.float32)[:, None, :]

    w1 = jax.random.normal(k1, (K, Cin, Fc), jnp.float32) * (1.0 / math.sqrt(K * Cin))
    b1 = jax.random.normal(k2, (Fc,), jnp.float32) * 0.02
    w2 = jax.random.normal(k3, (K, Fc, Cout), jnp.float32) * (1.0 / math.sqrt(K * Fc))
    b2 = jax.random.normal(k4, (Cout,), jnp.float32) * 0.02

    out = ffn_forward(x, x_mask, w1, b1, w2, b2)
    out = jax.block_until_ready(out)
    assert out.shape == (B, Cout, T) and out.dtype == jnp.float32

    # Correctness check vs a pure-XLA f32 reference using the same bf16-rounded
    # activations and weights as the kernel's matmul operands (f32 accumulate).
    x_r = x.astype(jnp.bfloat16).astype(jnp.float32)
    w1_r = w1.astype(jnp.bfloat16).astype(jnp.float32)
    w2_r = w2.astype(jnp.bfloat16).astype(jnp.float32)
    ref = ffn_reference(x_r, x_mask, w1_r, b1, w2_r, b2)
    err = float(jnp.max(jnp.abs(out - ref)))
    assert err < 5e-2, f"max abs err vs reference: {err}"

    print("KERNEL_OK")
</pallas_src>

<mosaic_0001>
module attributes {stable_mosaic.version = 11 : i64} {
  func.func @ffn_kernel(%arg0: i32, %arg1: memref<2xi32, #tpu.memory_space<smem>>, %arg2: memref<1x20x128xbf16, #tpu.memory_space<vmem>>, %arg3: memref<384x128xbf16, #tpu.memory_space<vmem>>, %arg4: memref<1x128xf32, #tpu.memory_space<vmem>>, %arg5: memref<384x128xbf16, #tpu.memory_space<vmem>>, %arg6: memref<1x128xf32, #tpu.memory_space<vmem>>, %arg7: memref<1x16x128xf32, #tpu.memory_space<vmem>>) attributes {dimension_semantics = [#tpu.dimension_semantics<parallel>], iteration_bounds = array<i64: 2>, scalar_prefetch = 1 : i64, scratch_operands = 0 : i64, tpu.core_type = #tpu.core_type<tc>, window_params = [{transform_indices = @transform_0, window_bounds = array<i64: 1, 20, 128>}, {pipeline_mode = #tpu.pipeline_mode<synchronous>, transform_indices = @transform_1, window_bounds = array<i64: 384, 128>}, {pipeline_mode = #tpu.pipeline_mode<synchronous>, transform_indices = @transform_2, window_bounds = array<i64: 1, 128>}, {pipeline_mode = #tpu.pipeline_mode<synchronous>, transform_indices = @transform_3, window_bounds = array<i64: 384, 128>}, {pipeline_mode = #tpu.pipeline_mode<synchronous>, transform_indices = @transform_4, window_bounds = array<i64: 1, 128>}, {transform_indices = @transform_5, window_bounds = array<i64: 1, 16, 128>}]} {
    %0 = arith.index_cast %arg0 : i32 to index
    %1 = memref.load %arg1[%0] : memref<2xi32, #tpu.memory_space<smem>>
    %c0 = arith.constant 0 : index
    %c0_0 = arith.constant 0 : index
    %c0_1 = arith.constant 0 : index
    %2 = vector.load %arg2[%c0, %c0_0, %c0_1] : memref<1x20x128xbf16, #tpu.memory_space<vmem>>, vector<1x20x128xbf16>
    %3 = vector.shape_cast %2 : vector<1x20x128xbf16> to vector<20x128xbf16>
    %4 = tpu.iota {dimensions = array<i32: 0>} : vector<20x1xi32>
    %c2_i32 = arith.constant 2 : i32
    %5 = vector.broadcast %c2_i32 : i32 to vector<20x1xi32>
    %6 = arith.cmpi sge, %4, %5 : vector<20x1xi32>
    %c2_i32_2 = arith.constant 2 : i32
    %7 = arith.addi %1, %c2_i32_2 : i32
    %8 = vector.broadcast %7 : i32 to vector<20x1xi32>
    %9 = arith.cmpi slt, %4, %8 : vector<20x1xi32>
    %10 = arith.andi %6, %9 : vector<20x1xi1>
    %cst = arith.constant 0.000000e+00 : bf16
    %11 = vector.broadcast %cst : bf16 to vector<20x128xbf16>
    %12 = vector.shape_cast %10 : vector<20x1xi1> to vector<20x1xi1>
    %13 = vector.broadcast %12 : vector<20x1xi1> to vector<20x128xi1>
    %14 = arith.select %13, %3, %11 : vector<20x128xi1>, vector<20x128xbf16>
    %15 = vector.extract_strided_slice %14 {offsets = [0, 0], sizes = [18, 128], strides = [1, 1]} : vector<20x128xbf16> to vector<18x128xbf16>
    %c0_3 = arith.constant 0 : index
    %c0_4 = arith.constant 0 : index
    %16 = vector.load %arg3[%c0_3, %c0_4] : memref<384x128xbf16, #tpu.memory_space<vmem>>, vector<128x128xbf16>
    %cst_5 = arith.constant dense<0.000000e+00> : vector<18x128xf32>
    %17 = tpu.matmul %15, %16, %cst_5 {dimension_numbers = #tpu.dot_dimension_numbers<[1], [0], [0], [1], [0, 0, 1, 1], [], []>} : vector<18x128xbf16>, vector<128x128xbf16>, vector<18x128xf32> -> vector<18x128xf32>
    %18 = vector.extract_strided_slice %14 {offsets = [1, 0], sizes = [18, 128], strides = [1, 1]} : vector<20x128xbf16> to vector<18x128xbf16>
    %c128 = arith.constant 128 : index
    %c0_6 = arith.constant 0 : index
    %19 = vector.load %arg3[%c128, %c0_6] : memref<384x128xbf16, #tpu.memory_space<vmem>>, vector<128x128xbf16>
    %cst_7 = arith.constant dense<0.000000e+00> : vector<18x128xf32>
    %20 = tpu.matmul %18, %19, %cst_7 {dimension_numbers = #tpu.dot_dimension_numbers<[1], [0], [0], [1], [0, 0, 1, 1], [], []>} : vector<18x128xbf16>, vector<128x128xbf16>, vector<18x128xf32> -> vector<18x128xf32>
    %21 = arith.addf %17, %20 : vector<18x128xf32>
    %22 = vector.extract_strided_slice %14 {offsets = [2, 0], sizes = [18, 128], strides = [1, 1]} : vector<20x128xbf16> to vector<18x128xbf16>
    %c256 = arith.constant 256 : index
    %c0_8 = arith.constant 0 : index
    %23 = vector.load %arg3[%c256, %c0_8] : memref<384x128xbf16, #tpu.memory_space<vmem>>, vector<128x128xbf16>
    %cst_9 = arith.constant dense<0.000000e+00> : vector<18x128xf32>
    %24 = tpu.matmul %22, %23, %cst_9 {dimension_numbers = #tpu.dot_dimension_numbers<[1], [0], [0], [1], [0, 0, 1, 1], [], []>} : vector<18x128xbf16>, vector<128x128xbf16>, vector<18x128xf32> -> vector<18x128xf32>
    %25 = arith.addf %21, %24 : vector<18x128xf32>
    %c0_10 = arith.constant 0 : index
    %c0_11 = arith.constant 0 : index
    %26 = vector.load %arg4[%c0_10, %c0_11] : memref<1x128xf32, #tpu.memory_space<vmem>>, vector<1x128xf32>
    %27 = vector.broadcast %26 : vector<1x128xf32> to vector<18x128xf32>
    %28 = arith.addf %25, %27 : vector<18x128xf32>
    %29 = tpu.iota {dimensions = array<i32: 0>} : vector<18x1xi32>
    %c1_i32 = arith.constant 1 : i32
    %30 = vector.broadcast %c1_i32 : i32 to vector<18x1xi32>
    %31 = arith.cmpi sge, %29, %30 : vector<18x1xi32>
    %c1_i32_12 = arith.constant 1 : i32
    %32 = arith.addi %1, %c1_i32_12 : i32
    %33 = vector.broadcast %32 : i32 to vector<18x1xi32>
    %34 = arith.cmpi slt, %29, %33 : vector<18x1xi32>
    %35 = arith.andi %31, %34 : vector<18x1xi1>
    %cst_13 = arith.constant 0.000000e+00 : f32
    %36 = vector.broadcast %cst_13 : f32 to vector<18x128xf32>
    %37 = arith.maximumf %28, %36 : vector<18x128xf32>
    %cst_14 = arith.constant 0.000000e+00 : f32
    %38 = vector.shape_cast %35 : vector<18x1xi1> to vector<18x1xi1>
    %39 = vector.broadcast %38 : vector<18x1xi1> to vector<18x128xi1>
    %40 = vector.broadcast %cst_14 : f32 to vector<18x128xf32>
    %41 = arith.select %39, %37, %40 : vector<18x128xi1>, vector<18x128xf32>
    %42 = arith.truncf %41 : vector<18x128xf32> to vector<18x128xbf16>
    %43 = vector.extract_strided_slice %42 {offsets = [0, 0], sizes = [16, 128], strides = [1, 1]} : vector<18x128xbf16> to vector<16x128xbf16>
    %c0_15 = arith.constant 0 : index
    %c0_16 = arith.constant 0 : index
    %44 = vector.load %arg5[%c0_15, %c0_16] : memref<384x128xbf16, #tpu.memory_space<vmem>>, vector<128x128xbf16>
    %cst_17 = arith.constant dense<0.000000e+00> : vector<16x128xf32>
    %45 = tpu.matmul %43, %44, %cst_17 {dimension_numbers = #tpu.dot_dimension_numbers<[1], [0], [0], [1], [0, 0, 1, 1], [], []>} : vector<16x128xbf16>, vector<128x128xbf16>, vector<16x128xf32> -> vector<16x128xf32>
    %46 = vector.extract_strided_slice %42 {offsets = [1, 0], sizes = [16, 128], strides = [1, 1]} : vector<18x128xbf16> to vector<16x128xbf16>
    %c128_18 = arith.constant 128 : index
    %c0_19 = arith.constant 0 : index
    %47 = vector.load %arg5[%c128_18, %c0_19] : memref<384x128xbf16, #tpu.memory_space<vmem>>, vector<128x128xbf16>
    %cst_20 = arith.constant dense<0.000000e+00> : vector<16x128xf32>
    %48 = tpu.matmul %46, %47, %cst_20 {dimension_numbers = #tpu.dot_dimension_numbers<[1], [0], [0], [1], [0, 0, 1, 1], [], []>} : vector<16x128xbf16>, vector<128x128xbf16>, vector<16x128xf32> -> vector<16x128xf32>
    %49 = arith.addf %45, %48 : vector<16x128xf32>
    %50 = vector.extract_strided_slice %42 {offsets = [2, 0], sizes = [16, 128], strides = [1, 1]} : vector<18x128xbf16> to vector<16x128xbf16>
    %c256_21 = arith.constant 256 : index
    %c0_22 = arith.constant 0 : index
    %51 = vector.load %arg5[%c256_21, %c0_22] : memref<384x128xbf16, #tpu.memory_space<vmem>>, vector<128x128xbf16>
    %cst_23 = arith.constant dense<0.000000e+00> : vector<16x128xf32>
    %52 = tpu.matmul %50, %51, %cst_23 {dimension_numbers = #tpu.dot_dimension_numbers<[1], [0], [0], [1], [0, 0, 1, 1], [], []>} : vector<16x128xbf16>, vector<128x128xbf16>, vector<16x128xf32> -> vector<16x128xf32>
    %53 = arith.addf %49, %52 : vector<16x128xf32>
    %c0_24 = arith.constant 0 : index
    %c0_25 = arith.constant 0 : index
    %54 = vector.load %arg6[%c0_24, %c0_25] : memref<1x128xf32, #tpu.memory_space<vmem>>, vector<1x128xf32>
    %55 = vector.broadcast %54 : vector<1x128xf32> to vector<16x128xf32>
    %56 = arith.addf %53, %55 : vector<16x128xf32>
    %57 = tpu.iota {dimensions = array<i32: 0>} : vector<16x1xi32>
    %58 = vector.broadcast %1 : i32 to vector<16x1xi32>
    %59 = arith.cmpi slt, %57, %58 : vector<16x1xi32>
    %cst_26 = arith.constant 0.000000e+00 : f32
    %60 = vector.shape_cast %59 : vector<16x1xi1> to vector<16x1xi1>
    %61 = vector.broadcast %60 : vector<16x1xi1> to vector<16x128xi1>
    %62 = vector.broadcast %cst_26 : f32 to vector<16x128xf32>
    %63 = arith.select %61, %56, %62 : vector<16x128xi1>, vector<16x128xf32>
    %c0_27 = arith.constant 0 : index
    %c0_28 = arith.constant 0 : index
    %c0_29 = arith.constant 0 : index
    %64 = vector.load %arg7[%c0_27, %c0_28, %c0_29] : memref<1x16x128xf32, #tpu.memory_space<vmem>>, vector<1x16x128xf32>
    %65 = vector.shape_cast %64 : vector<1x16x128xf32> to vector<16x128xf32>
    %66 = vector.shape_cast %63 : vector<16x128xf32> to vector<1x16x128xf32>
    tpu.vector_store %arg7[%c0_27, %c0_28, %c0_29], %66 {strides = array<i32>} : memref<1x16x128xf32, #tpu.memory_space<vmem>>, vector<1x16x128xf32>,
    return
  }
  func.func @transform_0(%arg0: i32, %arg1: memref<2xi32, #tpu.memory_space<smem>>) -> (i32, i32, i32) {
    %c0_i32 = arith.constant 0 : i32
    %c0_i32_0 = arith.constant 0 : i32
    %c0_i32_1 = arith.constant 0 : i32
    return %arg0, %c0_i32, %c0_i32_0 : i32, i32, i32
  }
  func.func @transform_1(%arg0: i32, %arg1: memref<2xi32, #tpu.memory_space<smem>>) -> (i32, i32) {
    %c0_i32 = arith.constant 0 : i32
    %c0_i32_0 = arith.constant 0 : i32
    %c0_i32_1 = arith.constant 0 : i32
    return %c0_i32, %c0_i32_0 : i32, i32
  }
  func.func @transform_2(%arg0: i32, %arg1: memref<2xi32, #tpu.memory_space<smem>>) -> (i32, i32) {
    %c0_i32 = arith.constant 0 : i32
    %c0_i32_0 = arith.constant 0 : i32
    %c0_i32_1 = arith.constant 0 : i32
    return %c0_i32, %c0_i32_0 : i32, i32
  }
  func.func @transform_3(%arg0: i32, %arg1: memref<2xi32, #tpu.memory_space<smem>>) -> (i32, i32) {
    %c0_i32 = arith.constant 0 : i32
    %c0_i32_0 = arith.constant 0 : i32
    %c0_i32_1 = arith.constant 0 : i32
    return %c0_i32, %c0_i32_0 : i32, i32
  }
  func.func @transform_4(%arg0: i32, %arg1: memref<2xi32, #tpu.memory_space<smem>>) -> (i32, i32) {
    %c0_i32 = arith.constant 0 : i32
    %c0_i32_0 = arith.constant 0 : i32
    %c0_i32_1 = arith.constant 0 : i32
    return %c0_i32, %c0_i32_0 : i32, i32
  }
  func.func @transform_5(%arg0: i32, %arg1: memref<2xi32, #tpu.memory_space<smem>>) -> (i32, i32, i32) {
    %c0_i32 = arith.constant 0 : i32
    %c0_i32_0 = arith.constant 0 : i32
    %c0_i32_1 = arith.constant 0 : i32
    return %arg0, %c0_i32, %c0_i32_0 : i32, i32, i32
  }
}

</mosaic_0001>

<bundles_post_ra>
// kernel: tpu_custom_call.1
= control target key start
LH: loop header
LB: loop body
LE: loop exit
PB: predicated region body
PF: predicated region fallthrough
CT: control target
= control target key end

     0   :  { %s2260_s0 = inlined_call_operand.hbm [shape: s32[2], index: 0, kind: input, shape index: {}]   ;;  %s2261_s1 = inlined_call_operand.hbm [shape: bf16[2,20,128], index: 1, kind: input, shape index: {}]   ;;  %s2262_s2 = inlined_call_operand.hbm [shape: bf16[384,128], index: 2, kind: input, shape index: {}]   ;;  %s2263_s3 = inlined_call_operand.hbm [shape: f32[1,128], index: 3, kind: input, shape index: {}]   ;;  %s2264_s4 = inlined_call_operand.hbm [shape: bf16[384,128], index: 4, kind: input, shape index: {}]   ;;  %s2265_s5 = inlined_call_operand.hbm [shape: f32[1,128], index: 5, kind: input, shape index: {}]   ;;  %s2266_s6 = inlined_call_operand.hbm [shape: f32[2,16,128], index: 6, kind: output, shape index: {}]  }
   0x1   :  { %s1620_s23 = scalar_lea.hbm %s2260_s0, 16 }
   0x2   :  { %p1621_p0 = scmp.ne.s32.totalorder %s2260_s0, %s1620_s23  ;;  %p1624_p1 = scmp.lt.u32.totalorder %s1620_s23, %s2260_s0 }
   0x4   :  { %p1626_p2 = pnand %p1624_p1, %p1621_p0 }
   0x6   :  { %1629 = shalt.err (!%p1626_p2)  }
   0x7   :  { %s1850_s28 = smov [#allocation3]  }
   0x8   :  { %12 = dma.hbm_to_smem %s2260_s0, 16, %s1850_s28, [#allocation2] }
   0x9   :  { %1816 = dma.done.wait [#allocation2], 16 }
   0xa   :  { %1817 = vsyncadd [#allocation2], 4294967280 }
   0xb   :  { %14 = sfence }
   0xc   :  { %15 = vsyncpa [#allocation5], 0 }
   0xd   :  { %17 = vsyncpa [#allocation5 + $0x1], 0 }
   0xe   :  { %18 = vsyncpa [#allocation8], 0 }
   0xf   :  { %19 = vsyncpa [#allocation11], 0 }
  0x10   :  { %20 = vsyncpa [#allocation6], 0 }
  0x11   :  { %22 = vsyncpa [#allocation6 + $0x1], 0  ;;  %s1910_s7 = smov 0   ;;  %s1912_s8 = smov 0  }
  0x12   :  { %s1914_s9 = smov 0   ;;  %s1916_s10 = smov 0  }
  0x13 LB: > { %s1931_s0 = sadd.s32 4294967295, %s1848_s10   ;;  %s1223_s11 = sadd.s32 4294967294, %s1848_s10   ;;  %s1848_s10 = sphi %s1916_s10, %s2291_s10   ;;  %s1844_s9 = sphi %s1914_s9, %s2290_s9   ;;  %s1840_s8 = sphi %s1912_s8, %s2289_s8   ;;  %s1836_s7 = sphi %s1910_s7, %s2288_s7  }
  0x14   : > { %p48_p3 = scmp.ne.s32.totalorder %s1840_s8, %s1836_s7  ;;  %p2267_p4 = scmp.eq.s32.totalorder %s1931_s0, 0 }
  0x15   : > { %p162_p6 = scmp.eq.s32.totalorder %s1223_s11, 1  ;;  %p1224_p8 = scmp.ge.s32.totalorder %s1848_s10, 1 }
  0x16   : > { %p1940_p7 = por %p2267_p4, %p48_p3  ;;  %p169_p10 = scmp.lt.s32.totalorder %s1848_s10, 3 }
  0x17   : > { %p1945_p9 = por %p162_p6, %p48_p3  ;;  %s1851_s15 = smov [#allocation7]  }
  0x18   : > { %s2271_s12 = scalar_select %p1940_p7, 1, 0 }
  0x19   : > { %s2272_s13 = scalar_select %p1945_p9, 1, 0 }
  0x1a   : > { %p1950_p11 = pnand %p1224_p8, %p169_p10  ;;  %s181_s16 = sshll.u32 %s1851_s15, 4  ;;  %s1954_s16 = int_to_ptr.vmem [resolvable:$true] %s181_s16 }
  0x1b   : > { %s1852_s18 = smov [#allocation10]   ;;  %s1853_s20 = smov [#allocation9]  }
  0x1c   : > { %s2273_s14 = scalar_select %p1950_p11, 1, 0 }
  0x1d   : > { %p1498_p12 = pneg %p1950_p11  ;;  %s205_s19 = sshll.u32 %s1852_s18, 4  ;;  %s1965_s19 = int_to_ptr.vmem [resolvable:$true] %s205_s19 }
  0x1e   : > { %s1967_s21 = sshll.u32 %s1853_s20, 4  ;;  %s1630_s24 = scalar_lea.hbm %s2262_s2, 3072  ;;  %s196_s21 = int_to_ptr.vmem [resolvable:$true] %s1967_s21 }
  0x1f   : > { %p1961_p0 = pnand %p1498_p12, %p2267_p4  ;;  %p1631_p1 = scmp.ne.s32.totalorder %s2262_s2, %s1630_s24 }
  0x20   : > { %p1637_p8 = scmp.lt.u32.totalorder %s1630_s24, %s2262_s2 }
  0x21   : > { %p1977_p2 = pneg %p1961_p0 }
  0x23   : > { %p1633_p3 = pnand %p1977_p2, %p1631_p1 }
  0x25   : > { %p1634_p6 = pneg %p1633_p3 }
  0x27   : > { %p1639_p10 = pnand %p1637_p8, %p1634_p6 }
  0x29   : > { %1642 = shalt.err (!%p1639_p10)
}
  0x2a   : > { %s1643_s30 = scalar_lea.vmem %s1954_s16, 3072  ;;  %p1651_p5 = scmp.lt.s32.totalorder %s1954_s16, %s1954_s16 }
  0x2b   : > { %p1644_p12 = scmp.ne.s32.totalorder %s1954_s16, %s1643_s30  ;;  %p1652_p9 = scmp.lt.s32.totalorder %s1643_s30, %s1643_s30 }
  0x2d   : > { %p1646_p13 = pnand %p1644_p12, %p1977_p2  ;;  %p1653_p1 = por %p1652_p9, %p1651_p5 }
  0x2f   : > { %p1647_p4 = pneg %p1646_p13 }
  0x31   : > { %p1654_p3 = pnand %p1653_p1, %p1647_p4 }
  0x33   : > { %1657 = shalt.err (!%p1654_p3)
}
  0x34   : > { %s2270_s11 = smov 64   ;;  %s1855_s15 = smov 4  }
  0x35   : > { %1501 = dma.hbm_to_vmem [thread:$0]  (!%p1961_p0), %s2262_s2, 3072, %s1954_s16, [#allocation8], %s2270_s11, %s2270_s11, %s1855_s15  }
  0x36   : > { %s1658_s24 = scalar_lea.hbm %s2264_s4, 3072 }
  0x37   : > { %p1659_p4 = scmp.ne.s32.totalorder %s2264_s4, %s1658_s24  ;;  %p1665_p13 = scmp.lt.u32.totalorder %s1658_s24, %s2264_s4 }
  0x39   : > { %p1661_p5 = pnand %p1659_p4, %p1977_p2 }
  0x3b   : > { %p1662_p9 = pneg %p1661_p5 }
  0x3d   : > { %p1667_p6 = pnand %p1665_p13, %p1662_p9 }
  0x3f   : > { %1670 = shalt.err (!%p1667_p6)
}
  0x40   : > { %s1671_s16 = scalar_lea.vmem %s1965_s19, 3072  ;;  %p1679_p1 = scmp.lt.s32.totalorder %s1965_s19, %s1965_s19 }
  0x41   : > { %p1672_p8 = scmp.ne.s32.totalorder %s1965_s19, %s1671_s16  ;;  %p1680_p3 = scmp.lt.s32.totalorder %s1671_s16, %s1671_s16 }
  0x43   : > { %p1674_p10 = pnand %p1672_p8, %p1977_p2  ;;  %p1681_p4 = por %p1680_p3, %p1679_p1 }
  0x45   : > { %p1675_p12 = pneg %p1674_p10 }
  0x47   : > { %p1682_p5 = pnand %p1681_p4, %p1675_p12 }
  0x49   : > { %1685 = shalt.err (!%p1682_p5)
}
  0x4a   : > { %1507 = dma.hbm_to_vmem [thread:$0]  (!%p1961_p0), %s2264_s4, 3072, %s1965_s19, [#allocation11], %s2270_s11, %s2270_s11, %s1855_s15  }
  0x4b   : > { %s1686_s23 = scalar_lea.hbm %s2263_s3, 16 }
  0x4c   : > { %p1687_p9 = scmp.ne.s32.totalorder %s2263_s3, %s1686_s23  ;;  %p1693_p8 = scmp.lt.u32.totalorder %s1686_s23, %s2263_s3 }
  0x4e   : > { %p1689_p13 = pnand %p1687_p9, %p1977_p2 }
  0x50   : > { %p1690_p6 = pneg %p1689_p13 }
  0x52   : > { %p1695_p10 = pnand %p1693_p8, %p1690_p6 }
  0x54   : > { %1698 = shalt.err (!%p1695_p10)
}
  0x55   : > { %s1699_s29 = scalar_lea.vmem %s196_s21, 16  ;;  %s1706_s19 = scalar_lea.vmem %s196_s21, 32 }
  0x56   : > { %p1700_p12 = scmp.ne.s32.totalorder %s196_s21, %s1699_s29  ;;  %p1707_p4 = scmp.lt.s32.totalorder %s196_s21, %s196_s21 }
  0x57   : > { %p1708_p5 = scmp.lt.s32.totalorder %s1706_s19, %s1699_s29 }
  0x58   : > { %p1702_p1 = pnand %p1700_p12, %p1977_p2 }
  0x59   : > { %p1709_p7 = por %p1708_p5, %p1707_p4 }
  0x5a   : > { %p1703_p3 = pneg %p1702_p1 }
  0x5c   : > { %p1710_p11 = pnand %p1709_p7, %p1703_p3 }
  0x5e   : > { %1713 = shalt.err (!%p1710_p11)
}
  0x5f   : > { %1504 = dma.hbm_to_vmem [thread:$0]  (!%p1961_p0), %s2263_s3, 16, %s196_s21, [#allocation8]  }
  0x60   : > { %s1856_s18 = smov [#allocation12]   ;;  %s1714_s24 = scalar_lea.hbm %s2265_s5, 16 }
  0x61   : > { %s219_s20 = sshll.u32 %s1856_s18, 4  ;;  %p1715_p9 = scmp.ne.s32.totalorder %s2265_s5, %s1714_s24  ;;  %s220_s20 = int_to_ptr.vmem [resolvable:$true] %s219_s20 }
  0x62   : > { %p1721_p13 = scmp.lt.u32.totalorder %s1714_s24, %s2265_s5 }
  0x63   : > { %p1717_p7 = pnand %p1715_p9, %p1977_p2 }
  0x65   : > { %p1718_p11 = pneg %p1717_p7 }
  0x67   : > { %p1723_p6 = pnand %p1721_p13, %p1718_p11 }
  0x69   : > { %1726 = shalt.err (!%p1723_p6)
}
  0x6a   : > { %s1727_s21 = scalar_lea.vmem %s220_s20, 16  ;;  %s1734_s19 = scalar_lea.vmem %s220_s20, 32 }
  0x6b   : > { %p1728_p8 = scmp.ne.s32.totalorder %s220_s20, %s1727_s21  ;;  %p1735_p1 = scmp.lt.s32.totalorder %s220_s20, %s220_s20 }
  0x6c   : > { %p1736_p3 = scmp.lt.s32.totalorder %s1734_s19, %s1727_s21 }
  0x6d   : > { %p1730_p10 = pnand %p1728_p8, %p1977_p2 }
  0x6e   : > { %p1737_p4 = por %p1736_p3, %p1735_p1 }
  0x6f   : > { %p1731_p12 = pneg %p1730_p10 }
  0x71   : > { %p1738_p5 = pnand %p1737_p4, %p1731_p12 }
  0x73   : > { %1741 = shalt.err (!%p1738_p5)
}
  0x74   : > { %1510 = dma.hbm_to_vmem [thread:$0]  (!%p1961_p0), %s2265_s5, 16, %s220_s20, [#allocation11]  }
  0x75   : > { %s2065_s27 = sadd.s32 1, %s1848_s10   ;;  %s35_s18 = sadd.s32 1, %s1844_s9 }
  0x76   : > { %s32_s17 = ssub.s32 %s1848_s10, %s2065_s27  ;;  %p42_p2 = scmp.ne.s32.totalorder %s1844_s9, %s1840_s8 }
  0x77   : > { %p33_p9 = scmp.eq.s32.totalorder %s32_s17, 0  ;;  %p43_p7 = scmp.eq.s32.totalorder %s1848_s10, 0 }
  0x78   : > { %p2276_p11 = scmp.eq.s32.totalorder %s1931_s0, 1  ;;  %p1523_p6 = scmp.lt.s32.totalorder %s1848_s10, 2 }
  0x79   : > { %s2081_s23 = scalar_select %p33_p9, %s1844_s9, %s35_s18  }
  0x7a   : > { %p2075_p13 = por %p2276_p11, %p42_p2  ;;  %p44_p8 = por %p43_p7, %p42_p2 }
  0x7b   : > { %s230_s24 = sand.u32 1, %s1844_s9   ;;  %s1476_s20 = smul.u32 192, %s1848_s10 }
  0x7c   : > { %s1475_s25 = smul.u32 12, %s230_s24  ;;  %p2085_p0 = pnand %p1523_p6, %p44_p8 }
  0x7d   : > { %s2092_s21 = scalar_lea.hbm %s2261_s1, %s1476_s20  ;;  %s2096_s30 = scalar_lea.sflag [#allocation5], %s230_s24 }
  0x7e   : > { %s234_s19 = scalar_lea.vmem [#allocation4], %s1475_s25  ;;  %s1742_s18 = scalar_lea.hbm %s2092_s21, 192 }
  0x7f   : > { %s241_s16 = sshll.u32 %s234_s19, 4  ;;  %p1743_p10 = scmp.ne.s32.totalorder %s2092_s21, %s1742_s18  ;;  %s2094_s16 = int_to_ptr.vmem [resolvable:$true] %s241_s16 }
  0x80   : > { %p1744_p12 = pneg %p2085_p0  ;;  %s1747_s28 = scalar_lea.hbm %s2261_s1, 384 }
  0x81   : > { %p1748_p4 = scmp.lt.u32.totalorder %s2092_s21, %s2261_s1  ;;  %p1749_p5 = scmp.lt.u32.totalorder %s1747_s28, %s1742_s18 }
  0x82   : > { %p1745_p1 = pnand %p1744_p12, %p1743_p10  ;;  %p1751_p9 = scmp.lt.u32.totalorder %s1742_s18, %s2092_s21 }
  0x83   : > { %p1750_p2 = por %p1749_p5, %p1748_p4 }
  0x84   : > { %p1746_p3 = pneg %p1745_p1 }
  0x85   : > { %p1752_p7 = por %p1751_p9, %p1750_p2 }
  0x87   : > { %p1753_p11 = pnand %p1752_p7, %p1746_p3 }
  0x89   : > { %1756 = shalt.err (!%p1753_p11)
}
  0x8a   : > { %s1757_s24 = scalar_lea.vmem %s2094_s16, 192  ;;  %s1857_s25 = smov [#allocation4]  }
  0x8b   : > { %p1758_p6 = scmp.ne.s32.totalorder %s2094_s16, %s1757_s24  ;;  %s1762_s19 = sshll.u32 %s1857_s25, 4  ;;  %s1763_s19 = int_to_ptr.vmem [resolvable:$false] %s1762_s19 }
  0x8c   : > { %s1764_s11 = scalar_lea.vmem %s1763_s19, 384  ;;  %p1765_p1 = scmp.lt.s32.totalorder %s2094_s16, %s1763_s19 }
  0x8d   : > { %p1760_p8 = pnand %p1758_p6, %p1744_p12  ;;  %p1766_p4 = scmp.lt.s32.totalorder %s1764_s11, %s1757_s24 }
  0x8f   : > { %p1761_p10 = pneg %p1760_p8  ;;  %p1767_p5 = por %p1766_p4, %p1765_p1 }
  0x91   : > { %p1768_p2 = pnand %p1767_p5, %p1761_p10 }
  0x93   : > { %1771 = shalt.err (!%p1768_p2)
}
  0x94   : > { %s2279_s18 = smov 64   ;;  %p2280_p12 = scmp.ne.s32.totalorder %s2273_s14, 0 }
  0x95   : > { %1514 = dma.hbm_to_vmem [thread:$0]  (!%p2085_p0), %s2092_s21, 192, %s2094_s16, %s2096_s30, %s2279_s18, %s2279_s18, %s1855_s15  }
  0x96   : > { %253 = sbr.rel (%p2280_p12) target bundleno = 726 (0x2d6), region = 40  ;;  %s2130_s17 = sand.u32 (!%p2280_p12), 1, %s1840_s8  }
  0x97   : > { %s1477_s20 = smul.u32 (!%p2280_p12), 12, %s2130_s17  ;;  %s256_s28 = scalar_lea.sflag (!%p2280_p12), [#allocation5], %s2130_s17 }
  0x98   : > { %p2281_p3 = scmp.ne.s32.totalorder (!%p2280_p12), %s2271_s12, 0 }
  0x99   : > { %s2134_s29 = scalar_lea.vmem (!%p2280_p12), [#allocation4], %s1477_s20 }
  0x9d   : > { %1819 = dma.done.wait (%p2281_p3), %s256_s28, 192  }
  0x9e   : > { %1821 = vsyncadd (%p2281_p3), %s256_s28, 4294967104  ;;  %p2282_p0 = scmp.eq.s32.totalorder %s1931_s0, 0 }
  0xa0   : > { %1823 = dma.done.wait (%p2282_p0), [#allocation8], 3088   ;;  %p2283_p9 = pmov %p2282_p0 }
  0xa1   : > { %p2284_p7 = pmov %p2282_p0 }
  0xa2   : > { %1825 = vsyncadd (%p2283_p9), [#allocation8], 4294964208 }
  0xa3   : > { %1827 = dma.done.wait (%p2284_p7), [#allocation11], 3088   ;;  %p2285_p11 = pmov %p2282_p0 }
  0xa4   : > { %v1572_v0 = vld [vmem:[#allocation7 + $0x40] sm:$0xff]   ;;  %s2149_s14 = sld [smem:[#allocation3 + %s1931_s0]]  ;;  %v1574_v2 = vld [vmem:[#allocation7 + $0x48] sm:$0xff]   ;;  %v307_v4 = vlaneseq  ;;  %v1576_v5 = vld [vmem:[#allocation7 + $0x50] sm:$0xff]   ;;  %vm374_vm8 = vsmask.f32 7424 }
  0xa5   : > { %1829 = vsyncadd (%p2285_p11), [#allocation11], 4294964208  ;;  %v1573_v1 = vld [vmem:[#allocation7] sm:$0xff]   ;;  %1355 = vmatprep.subr.bf16.mxu0 %v1572_v0  ;;  %v1575_v3 = vld [vmem:[#allocation7 + $0x8] sm:$0xff]   ;;  %vm602_vm9 = vcmask 1046528   ;;  %v1858_v51 = vmov 0.0  }
  0xa6   : > { %1375 = vmatprep.subr.bf16.mxu1 %v1573_v1  ;;  %1356 = vmatpush3.bf16.msra.mxu0 %v1572_v0  ;;  %v1577_v6 = vld [vmem:[#allocation7 + $0x10] sm:$0xff]   ;;  %v2151_v7 = vshrl.u32 %v307_v4, 7  ;;  %v1578_v8 = vld [vmem:[#allocation7 + $0x58] sm:$0xff]   ;;  %v1580_v11 = vld [vmem:[#allocation7 + $0x60] sm:$0xff]   ;;  %vm1859_vm10 = vmmov 0   ;;  %s1236_s26 = sshll.u32 %s2130_s17, 4 }
  0xa7   : > { %1376 = vmatpush3.bf16.msra.mxu1 %v1573_v1  ;;  %1357 = vmatprep.subr.bf16.mxu0 %v1574_v2  ;;  %v1579_v9 = vld [vmem:[#allocation7 + $0x18] sm:$0xff]   ;;  %v1581_v13 = vld [vmem:[#allocation7 + $0x20] sm:$0xff]   ;;  %v1582_v15 = vld [vmem:[#allocation7 + $0x68] sm:$0xff]   ;;  %s301_s21 = scalar_lea.vmem [#allocation13], %s1236_s26  ;;  %s1297_s30 = sshll.u32 %s1931_s0, 8 }
  0xa8   : > { %1377 = vmatprep.subr.bf16.mxu1 %v1575_v3  ;;  %v2155_v12 = vadd.s32 8, %v2151_v7  ;;  %v2158_v14 = vadd.s32 16, %v2151_v7  ;;  %vm311_vm0 = vcmp.ge.s32.totalorder %v2151_v7, 2  ;;  %v1583_v16 = vld [vmem:[#allocation7 + $0x28] sm:$0xff]   ;;  %v306_v19 = vld [vmem:[%s2134_s29 + $0x8] sm:$0x3]  ;;  %s2216_s19 = scalar_lea.hbm %s2266_s6, %s1297_s30 }
  0xa9   : > { %v304_v17 = vld [vmem:[%s2134_s29] sm:$0xf]  ;;  %v305_v18 = vld [vmem:[%s2134_s29 + $0x4] sm:$0xf]  ;;  %v1588_v35 = vld [vmem:[#allocation7 + $0x80] sm:$0xff]   ;;  %vm717_vm12 = vcmp.ge.s32.totalorder %v2151_v7, 1 }
  0xaa   : > { %1358 = vmatpush3.bf16.msra.mxu0 %v1574_v2  ;;  %s314_s12 = sadd.s32 2, %s2149_s14  ;;  %v1584_v20 = vld [vmem:[#allocation7 + $0x70] sm:$0xff]   ;;  %v1586_v29 = vld [vmem:[#allocation7 + $0x78] sm:$0xff]   ;;  %v1589_v41 = vld [vmem:[#allocation7 + $0x88] sm:$0xff]   ;;  %s720_s15 = sadd.s32 1, %s2149_s14 }
  0xab   : > { %1378 = vmatpush3.bf16.msra.mxu1 %v1575_v3  ;;  %1359 = vmatprep.subr.bf16.mxu0 %v1576_v5  ;;  %v315_v10 = vstv %s314_s12  ;;  %v1585_v23 = vld [vmem:[#allocation7 + $0x30] sm:$0xff]   ;;  %v1587_v31 = vld [vmem:[#allocation7 + $0x38] sm:$0xff]   ;;  %v1592_v45 = vld [vmem:[#allocation7 + $0xa0] sm:$0xff]   ;;  %s1112_s16 = sshll.u32 %s301_s21, 4  ;;  %s1099_s0 = scalar_lea.sflag [#allocation6], %s2130_s17  ;;  %s2210_s16 = int_to_ptr.vmem [resolvable:$true] %s1112_s16 }
  0xac   : > { %1379 = vmatprep.subr.bf16.mxu1 %v1577_v6  ;;  %vm316_vm1 = vcmp.lt.s32.totalorder %v2151_v7, %v315_v10  ;;  %vm317_vm2 = vcmp.lt.s32.totalorder %v2155_v12, %v315_v10  ;;  %vm318_vm3 = vcmp.lt.s32.totalorder %v2158_v14, %v315_v10  ;;  %v1590_v43 = vld [vmem:[#allocation7 + $0x90] sm:$0xff]   ;;  %v1591_v44 = vld [vmem:[#allocation7 + $0x98] sm:$0xff]   ;;  %v1593_v46 = vld [vmem:[#allocation7 + $0xa8] sm:$0xff]   ;;  %s1772_s11 = scalar_lea.vmem %s2210_s16, 256  ;;  %s1860_s18 = smov [#allocation13]  }
  0xad   : > { %vm319_vm4 = vmand %vm311_vm0, %vm316_vm1  ;;  %v1594_v47 = vld [vmem:[#allocation7 + $0xb0] sm:$0xff]   ;;  %v1595_v48 = vld [vmem:[#allocation7 + $0xb8] sm:$0xff]   ;;  %p1773_p6 = scmp.ne.s32.totalorder %s2210_s16, %s1772_s11  ;;  %s1776_s20 = sshll.u32 %s1860_s18, 4  ;;  %s1777_s20 = int_to_ptr.vmem [resolvable:$false] %s1776_s20 }
  0xae   : > { %1360 = vmatpush3.bf16.msra.mxu0 %v1576_v5  ;;  %vm328_vm5 = vmpackc.low %vm319_vm4, %vm319_vm4  ;;  %v1596_v49 = vld [vmem:[#allocation10] sm:$0xff]   ;;  %v1597_v52 = vld [vmem:[#allocation10 + $0x8] sm:$0xff]   ;;  %s1778_s28 = scalar_lea.vmem %s1777_s20, 512  ;;  %p1779_p1 = scmp.lt.s32.totalorder %s2210_s16, %s1777_s20 }
  0xaf   : > { %1380 = vmatpush3.bf16.msra.mxu1 %v1577_v6  ;;  %1361 = vmatprep.subr.bf16.mxu0 %v1578_v8  ;;  %vm329_vm6 = vmpackc.low %vm317_vm2, %vm317_vm2  ;;  %v331_v21 = vsel %vm328_vm5, %v304_v17, 0  ;;  %v1598_v50 = vld [vmem:[#allocation10 + $0x40] sm:$0xff]   ;;  %v1600_v53 = vld [vmem:[#allocation10 + $0x48] sm:$0xff]   ;;  %p1774_p8 = pnand %p1773_p6, %p2075_p13  ;;  %p1780_p4 = scmp.lt.s32.totalorder %s1778_s28, %s1772_s11 }
  0xb0   : > { %1381 = vmatprep.subr.bf16.mxu1 %v1579_v9  ;;  %vm330_vm7 = vmpackc.low %vm318_vm3, %vm318_vm3  ;;  %v332_v22 = vsel %vm329_vm6, %v305_v18, 0  ;;  %v1599_v54 = vld [vmem:[#allocation10 + $0x10] sm:$0xff]   ;;  %v1601_v56 = vld [vmem:[#allocation10 + $0x18] sm:$0xff]   ;;  %v721_v18 = vstv %s720_s15 }
  0xb1   : > { %v333_v24 = vsel %vm330_vm7, %v306_v19, 0  ;;  %v1237_v25 = vcombine.low %v331_v21, %v332_v22  ;;  %v1602_v55 = vld [vmem:[#allocation10 + $0x50] sm:$0xff]   ;;  %v1603_v57 = vld [vmem:[#allocation10 + $0x20] sm:$0xff]   ;;  %v1604_v58 = vld [vmem:[#allocation10 + $0x58] sm:$0xff]   ;;  %vm724_vm11 = vcmp.lt.s32.totalorder %v2158_v14, %v721_v18  ;;  %vm722_vm13 = vcmp.lt.s32.totalorder %v2151_v7, %v721_v18  ;;  %p1775_p10 = pneg %p1774_p8  ;;  %p1781_p5 = por %p1780_p4, %p1779_p1 }
  0xb2   : > { %1362 = vmatpush3.bf16.msra.mxu0 %v1578_v8  ;;  %v1238_v26 = vcombine.low %v333_v24, %v333_v24  ;;  %v1605_v59 = vld [vmem:[#allocation10 + $0x28] sm:$0xff]   ;;  %v1606_v60 = vld [vmem:[#allocation10 + $0x60] sm:$0xff]   ;;  %v1607_v61 = vld [vmem:[#allocation10 + $0x30] sm:$0xff]   ;;  %vm723_vm14 = vcmp.lt.s32.totalorder %v2155_v12, %v721_v18 }
  0xb3   : > { %1382 = vmatpush3.bf16.msra.mxu1 %v1579_v9  ;;  %1363 = vmatprep.subr.bf16.mxu0 %v1580_v11  ;;  %v376_v27 = vshrl.u32 %v1237_v25, 16  ;;  %v378_v28 = vshll.u32 %v1237_v25, 16  ;;  %v603_v36 = vrot.slane %v1237_v25, 1  ;;  %v1608_v62 = vld [vmem:[#allocation10 + $0x68] sm:$0xff]   ;;  %v1609_v63 = vld [vmem:[#allocation10 + $0x38] sm:$0xff]   ;;  %v1610_v0 = vld [vmem:[#allocation10 + $0x70] sm:$0xff]   ;;  %p1782_p2 = pnand %p1781_p5, %p1775_p10 }
  0xb4   : > { %1383 = vmatprep.subr.bf16.mxu1 %v1581_v13  ;;  %1391 = vmatprep.mubr.bf16.mxu1 %v1237_v25  ;;  %v383_v30 = vshll.u32 %v1238_v26, 16  ;;  %v387_v34 = vshrl.u32 %v1238_v26, 16  ;;  %v604_v37 = vrot.slane %v1238_v26, 1  ;;  %v1611_v1 = vld [vmem:[#allocation10 + $0x78] sm:$0xff]   ;;  %vm725_vm15 = vmand %vm717_vm12, %vm722_vm13 }
  0xb5   : > { %v380_v32 = vrot.slane %v378_v28, 1  ;;  %v1263_v17 = vld [vmem:[#allocation9] ss:$0 sm:$0xff]  ;;  %vm1280_vm0 = vmpackc.low %vm723_vm14, %vm725_vm15 }
  0xb6   : > { %1364 = vmatpush3.bf16.msra.mxu0 %v1580_v11  ;;  %v385_v33 = vrot.slane %v383_v30, 1  ;;  %v605_v42 = vsel %vm602_vm9, %v603_v36, %v604_v37 }
  0xb7   : > { %1384 = vmatpush3.bf16.msra.mxu1 %v1581_v13  ;;  %1365 = vmatprep.subr.bf16.mxu0 %v1582_v15  ;;  %v381_v38 = vor.u32 %v380_v32, %v376_v27 }
  0xb8   : > { %1385 = vmatprep.subr.bf16.mxu1 %v1583_v16  ;;  %v389_v40 = vor.u32 %v387_v34, %v385_v33 }
  0xb9   : > { %v386_v39 = vsel %vm374_vm8, %v381_v38, %v385_v33 }
  0xba   : > { %1366 = vmatpush3.bf16.msra.mxu0 %v1582_v15  ;;  %1371 = vmatprep.mubr.bf16.mxu0 %v386_v39 }
  0xbb   : > { %1386 = vmatpush3.bf16.msra.mxu1 %v1583_v16  ;;  %1367 = vmatprep.subr.bf16.mxu0 %v1584_v20 }
  0xbc   : > { %1387 = vmatprep.subr.bf16.mxu1 %v1585_v23 }
  0xbe   : > { %1368 = vmatpush3.bf16.msra.mxu0 %v1584_v20 }
  0xbf   : > { %1388 = vmatpush3.bf16.msra.mxu1 %v1585_v23  ;;  %1369 = vmatprep.subr.bf16.mxu0 %v1586_v29 }
  0xc0   : > { %1389 = vmatprep.subr.bf16.mxu1 %v1587_v31 }
  0xc2   : > { %1370 = vmatpush3.bf16.msra.mxu0 %v1586_v29 }
  0xc3   : > { %1390 = vmatpush3.bf16.msra.mxu1 %v1587_v31  ;;  %1395 = vmatprep.subr.bf16.mxu0 %v1588_v35 }
  0xc4   : > { %1415 = vmatprep.subr.bf16.mxu1 %v1858_v51 }
  0xc5   : > { %1372 = vmatmul.mubr.bf16.vlgmr.msra.gmra.mrb[0].mxu0 %v389_v40 }
  0xc6   : > { %1392 = vmatmul.mubr.bf16.vlgmr.msra.gmra.mrb[0].mxu1 %v1238_v26  ;;  %1396 = vmatpush3.bf16.msra.mxu0 %v1588_v35 }
  0xc7   : > { %1397 = vmatprep.subr.bf16.mxu0 %v1589_v41  ;;  %1411 = vmatprep.mubr.bf16.mxu0 %v605_v42 }
  0xc8   : > { %1416 = vmatpush3.bf16.msra.mxu1 %v1598_v50  ;;  %1431 = vmatprep.mubr.msk.bf16.mxu1 %vm1859_vm10, %v1858_v51  ;;  %v1616_v50 = vld [vmem:[#allocation10 + $0xa0] sm:$0xff]  }
  0xc9   : > { %1417 = vmatprep.subr.bf16.mxu1 %v1858_v51 }
  0xca   : > { %1398 = vmatpush3.bf16.msra.mxu0 %v1589_v41 }
  0xcb   : > { %1399 = vmatprep.subr.bf16.mxu0 %v1590_v43 }
  0xcc   : > { %1418 = vmatpush3.bf16.msra.mxu1 %v1600_v53  ;;  %v1618_v53 = vld [vmem:[#allocation10 + $0xb0] sm:$0xff]  }
  0xcd   : > { %1419 = vmatprep.subr.bf16.mxu1 %v1858_v51 }
  0xce   : > { %1400 = vmatpush3.bf16.msra.mxu0 %v1590_v43 }
  0xcf   : > { %1401 = vmatprep.subr.bf16.mxu0 %v1591_v44 }
  0xd0   : > { %1420 = vmatpush3.bf16.msra.mxu1 %v1602_v55 }
  0xd1   : > { %1421 = vmatprep.subr.bf16.mxu1 %v1858_v51 }
  0xd2   : > { %1402 = vmatpush3.bf16.msra.mxu0 %v1591_v44 }
  0xd3   : > { %1403 = vmatprep.subr.bf16.mxu0 %v1592_v45 }
  0xd4   : > { %1422 = vmatpush3.bf16.msra.mxu1 %v1604_v58 }
  0xd5   : > { %1423 = vmatprep.subr.bf16.mxu1 %v1858_v51 }
  0xd6   : > { %1404 = vmatpush3.bf16.msra.mxu0 %v1592_v45  ;;  %v1612_v45 = vld [vmem:[#allocation10 + $0x80] sm:$0xff]  }
  0xd7   : > { %1405 = vmatprep.subr.bf16.mxu0 %v1593_v46 }
  0xd8   : > { %1424 = vmatpush3.bf16.msra.mxu1 %v1606_v60 }
  0xd9   : > { %1425 = vmatprep.subr.bf16.mxu1 %v1858_v51 }
  0xda   : > { %1406 = vmatpush3.bf16.msra.mxu0 %v1593_v46 }
  0xdb   : > { %1407 = vmatprep.subr.bf16.mxu0 %v1594_v47 }
  0xdc   : > { %1426 = vmatpush3.bf16.msra.mxu1 %v1608_v62 }
  0xdd   : > { %1427 = vmatprep.subr.bf16.mxu1 %v1858_v51 }
  0xde   : > { %1408 = vmatpush3.bf16.msra.mxu0 %v1594_v47  ;;  %v1613_v47 = vld [vmem:[#allocation10 + $0x88] sm:$0xff]  }
  0xdf   : > { %1409 = vmatprep.subr.bf16.mxu0 %v1595_v48 }
  0xe0   : > { %1428 = vmatpush3.bf16.msra.mxu1 %v1610_v0 }
  0xe1   : > { %1429 = vmatprep.subr.bf16.mxu1 %v1858_v51 }
  0xe2   : > { %1410 = vmatpush3.bf16.msra.mxu0 %v1595_v48  ;;  %v1614_v48 = vld [vmem:[#allocation10 + $0x90] sm:$0xff]  }
  0xe3   : > { %1435 = vmatprep.subr.bf16.mxu0 %v1858_v51 }
  0xe4   : > { %1430 = vmatpush3.bf16.msra.mxu1 %v1611_v1  ;;  %v1087_v1 = vstv %s2149_s14 }
  0xe5   : > { %1412 = vmatmul.mubr.bf16.vlgmr.msra.gmra.mrb[4].mxu0 %v604_v37  ;;  %1455 = vmatprep.subr.bf16.mxu1 %v1858_v51  ;;  %vm1088_vm1 = vcmp.lt.s32.totalorder %v2151_v7, %v1087_v1  ;;  %vm1089_vm2 = vcmp.lt.s32.totalorder %v2155_v12, %v1087_v1 }
  0xe6   : > { %1436 = vmatpush3.bf16.msra.mxu0 %v1596_v49  ;;  %1451 = vmatprep.mubr.msk.bf16.mxu0 %vm1859_vm10, %v1858_v51  ;;  %v1615_v49 = vld [vmem:[#allocation10 + $0x98] sm:$0xff]  }
  0xe7   : > { %1437 = vmatprep.subr.bf16.mxu0 %v1858_v51 }
  0xea   : > { %1438 = vmatpush3.bf16.msra.mxu0 %v1597_v52  ;;  %v1617_v52 = vld [vmem:[#allocation10 + $0xa8] sm:$0xff]  }
  0xeb   : > { %1439 = vmatprep.subr.bf16.mxu0 %v1858_v51 }
  0xee   : > { %1440 = vmatpush3.bf16.msra.mxu0 %v1599_v54  ;;  %v1619_v54 = vld [vmem:[#allocation10 + $0xb8] sm:$0xff]  }
  0xef   : > { %1441 = vmatprep.subr.bf16.mxu0 %v1858_v51 }
  0xf2   : > { %1442 = vmatpush3.bf16.msra.mxu0 %v1601_v56 }
  0xf3   : > { %1443 = vmatprep.subr.bf16.mxu0 %v1858_v51 }
  0xf6   : > { %1444 = vmatpush3.bf16.msra.mxu0 %v1603_v57 }
  0xf7   : > { %1445 = vmatprep.subr.bf16.mxu0 %v1858_v51 }
  0xfa   : > { %1446 = vmatpush3.bf16.msra.mxu0 %v1605_v59 }
  0xfb   : > { %1447 = vmatprep.subr.bf16.mxu0 %v1858_v51 }
  0xfe   : > { %1448 = vmatpush3.bf16.msra.mxu0 %v1607_v61 }
  0xff   : > { %1449 = vmatprep.subr.bf16.mxu0 %v1858_v51 }
 0x102   : > { %1450 = vmatpush3.bf16.msra.mxu0 %v1609_v63 }
 0x198   : > { %v1373_v2 = vpop.f32.mrb[0].mxu0 }
 0x199   : > { %v1393_v3 = vpop.f32.mrb[0].mxu1  ;;  %v474_v4 = vpop.f32.mrb[1].mxu0 }
 0x19a   : > { %v581_v5 = vadd.f32 %v1393_v3, %v1373_v2  ;;  %v572_v6 = vpop.f32.mrb[1].mxu1  ;;  %v1374_v8 = vpop.f32.mrb[2].mxu0  ;;  %v1291_v3 = vld [vmem:[#allocation12] ss:$0 sm:$0xff] }
 0x19b   : > { %v573_v9 = vadd.f32 %v572_v6, %v474_v4  ;;  %v1394_v10 = vpop.f32.mrb[2].mxu1  ;;  %v477_v11 = vpop.f32.mrb[3].mxu0 }
 0x19c   : > { %v575_v13 = vpop.f32.mrb[3].mxu1 }
 0x19d   : > { %v576_v15 = vadd.f32 %v575_v13, %v477_v11 }
 0x1b8   : > { %v1413_v16 = vpop.f32.mrb[4].mxu0 }
 0x1b9   : > { %v706_v19 = vadd.f32 %v1413_v16, %v581_v5  ;;  %v690_v20 = vpop.f32.mrb[5].mxu0 }
 0x1ba   : > { %v704_v21 = vadd.f32 %v690_v20, %v573_v9  ;;  %v1414_v22 = vpop.f32.mrb[6].mxu0 }
 0x1bb   : > { %v716_v23 = vadd.f32 %v1263_v17, %v706_v19  ;;  %v693_v24 = vpop.f32.mrb[7].mxu0 }
 0x1bc   : > { %v714_v25 = vadd.f32 %v1263_v17, %v704_v21  ;;  %v705_v26 = vadd.f32 %v693_v24, %v576_v15 }
 0x1bd   : > { %v730_v27 = vmax.f32 %v716_v23, 0.0 }
 0x1be   : > { %v728_v28 = vmax.f32 %v714_v25, 0.0  ;;  %v715_v29 = vadd.f32 %v1263_v17, %v705_v26 }
 0x1bf   : > { %v739_v30 = vsel %vm724_vm11, %v730_v27, 0.0 }
 0x1c0   : > { %v729_v31 = vmax.f32 %v715_v29, 0.0  ;;  %v741_v32 = vpack.c.bf16 %v739_v30, %v739_v30  ;;  %v737_v33 = vsel %vm725_vm15, %v728_v28, 0.0 }
 0x1c2   : > { %v738_v34 = vsel %vm723_vm14, %v729_v31, 0.0  ;;  %v1281_v14 = vpack.c.bf16 %v729_v31, %v728_v28  ;;  %v782_v36 = vshll.u32 %v741_v32, 16  ;;  %v984_v37 = vrot.slane %v741_v32, 1 }
 0x1c3   : > { %v740_v35 = vpack.c.bf16 %v738_v34, %v737_v33 }
 0x1c4   : > { %1452 = vmatmul.mubr.msk.bf16.vlgmr.msra.gmra.mrb[8].mxu0 %vm1280_vm0, %v1281_v14  ;;  %v784_v43 = vrot.slane %v782_v36, 1 }
 0x1c5   : > { %v777_v38 = vshll.u32 %v740_v35, 16  ;;  %v983_v39 = vrot.slane %v740_v35, 1  ;;  %v775_v40 = vshrl.u32 %v740_v35, 16 }
 0x1c7   : > { %v779_v41 = vrot.slane %v777_v38, 1  ;;  %v985_v42 = vsel %vm602_vm9, %v983_v39, %v984_v37 }
 0x1c9   : > { %v780_v44 = vor.u32 %v779_v41, %v775_v40 }
 0x1cb   : > { %v785_v46 = vsel %vm374_vm8, %v780_v44, %v784_v43 }
 0x1cc   : > { %1432 = vmatmul.mubr.bf16.vlgmr.msra.gmra.mrb[4].mxu1 %v785_v46 }
 0x1cd   : > { %1456 = vmatpush3.bf16.msra.mxu1 %v1612_v45  ;;  %1471 = vmatprep.mubr.msk.bf16.mxu1 %vm1859_vm10, %v1858_v51 }
 0x1ce   : > { %1457 = vmatprep.subr.bf16.mxu1 %v1858_v51 }
 0x1d1   : > { %1458 = vmatpush3.bf16.msra.mxu1 %v1613_v47 }
 0x1d2   : > { %1459 = vmatprep.subr.bf16.mxu1 %v1858_v51 }
 0x1d5   : > { %1460 = vmatpush3.bf16.msra.mxu1 %v1614_v48 }
 0x1d6   : > { %1461 = vmatprep.subr.bf16.mxu1 %v1858_v51 }
 0x1d9   : > { %1462 = vmatpush3.bf16.msra.mxu1 %v1615_v49 }
 0x1da   : > { %1463 = vmatprep.subr.bf16.mxu1 %v1858_v51 }
 0x1dd   : > { %1464 = vmatpush3.bf16.msra.mxu1 %v1616_v50 }
 0x1de   : > { %1465 = vmatprep.subr.bf16.mxu1 %v1858_v51 }
 0x1e1   : > { %1466 = vmatpush3.bf16.msra.mxu1 %v1617_v52 }
 0x1e2   : > { %1467 = vmatprep.subr.bf16.mxu1 %v1858_v51 }
 0x1e5   : > { %1468 = vmatpush3.bf16.msra.mxu1 %v1618_v53 }
 0x1e6   : > { %1469 = vmatprep.subr.bf16.mxu1 %v1858_v51 }
 0x1e9   : > { %1470 = vmatpush3.bf16.msra.mxu1 %v1619_v54 }
 0x1ec   : > { %1472 = vmatmul.mubr.bf16.vlgmr.msra.gmra.mrb[8].mxu1 %v985_v42 }
 0x297   : > { %v958_v55 = vpop.f32.mrb[8].mxu0 }
 0x298   : > { %v1453_v56 = vpop.f32.mrb[9].mxu0 }
 0x299   : > { %v961_v57 = vpop.f32.mrb[10].mxu0 }
 0x29a   : > { %v1454_v58 = vpop.f32.mrb[11].mxu0 }
 0x29f   : > { %v869_v59 = vpop.f32.mrb[4].mxu1 }
 0x2a0   : > { %v959_v60 = vadd.f32 %v958_v55, %v869_v59  ;;  %v1433_v61 = vpop.f32.mrb[5].mxu1 }
 0x2a1   : > { %v872_v62 = vpop.f32.mrb[6].mxu1 }
 0x2a2   : > { %v962_v63 = vadd.f32 %v961_v57, %v872_v62  ;;  %v1434_v0 = vpop.f32.mrb[7].mxu1 }
 0x2bf   : > { %v1069_v2 = vpop.f32.mrb[8].mxu1 }
 0x2c0   : > { %v1076_v4 = vadd.f32 %v1069_v2, %v959_v60  ;;  %v1473_v51 = vpop.f32.mrb[9].mxu1 }
 0x2c1   : > { %v1072_v5 = vpop.f32.mrb[10].mxu1 }
 0x2c2   : > { %v1085_v6 = vadd.f32 %v1291_v3, %v1076_v4  ;;  %v1077_v8 = vadd.f32 %v1072_v5, %v962_v63  ;;  %v1474_v9 = vpop.f32.mrb[11].mxu1 }
 0x2c4   : > { %v1094_v10 = vsel %vm1088_vm1, %v1085_v6, 0.0  ;;  %v1086_v11 = vadd.f32 %v1291_v3, %v1077_v8 }
 0x2c5   : > { %1096 = vst [vmem:[%s301_s21] sm:$0xff] %v1094_v10 }
 0x2c6   : > { %v1095_v7 = vsel %vm1089_vm2, %v1086_v11, 0.0 }
 0x2c7   : > { %1097 = vst [vmem:[%s301_s21 + $0x8] sm:$0xff] %v1095_v7 }
 0x2c8   : > { %1785 = shalt.err (!%p1782_p2)
}
 0x2c9   : > { %s1786_s29 = scalar_lea.hbm %s2216_s19, 256  ;;  %s1790_s15 = scalar_lea.hbm %s2266_s6, 512 }
 0x2ca   : > { %p1787_p12 = scmp.ne.s32.totalorder %s2216_s19, %s1786_s29  ;;  %p1791_p9 = scmp.lt.u32.totalorder %s2216_s19, %s2266_s6 }
 0x2cb   : > { %p1792_p7 = scmp.lt.u32.totalorder %s1790_s15, %s1786_s29  ;;  %p1794_p6 = scmp.lt.u32.totalorder %s1786_s29, %s2216_s19 }
 0x2cc   : > { %p1788_p3 = pnand %p1787_p12, %p2075_p13 }
 0x2cd   : > { %p1793_p11 = por %p1792_p7, %p1791_p9 }
 0x2ce   : > { %p1789_p0 = pneg %p1788_p3 }
 0x2cf   : > { %p1795_p8 = por %p1794_p6, %p1793_p11 }
 0x2d1   : > { %p1796_p10 = pnand %p1795_p8, %p1789_p0 }
 0x2d3   : > { %1799 = shalt.err (!%p1796_p10)
}
 0x2d4   : > { %s1861_s30 = smov 128   ;;  %s1862_s24 = smov 8  }
 0x2d5   : > { %1496 = dma.vmem_to_hbm [thread:$0]  (%p2075_p13), %s2210_s16, 256, %s2216_s19, %s1099_s0, %s1861_s30, %s1861_s30, %s1862_s24  }
 0x2d6 PF: > { %s1127_s25 = sand.u32 1, %s1836_s7   ;;  %p2286_p1 = scmp.ne.s32.totalorder %s2272_s13, 0 }
 0x2d7   : > { %p2287_p4 = scmp.ge.s32.totalorder %s1848_s10, 2  ;;  %s1128_s11 = scalar_lea.sflag [#allocation6], %s1127_s25 }
 0x2d9   : > { %p1516_p5 = pnand %p2287_p4, %p2286_p1 }
 0x2db   : > { %1831 = dma.done.wait (!%p1516_p5), %s1128_s11, 256  }
 0x2dc   : > { %1833 = vsyncadd (!%p1516_p5), %s1128_s11, 4294967040  ;;  %p25_p2 = scmp.ge.s32.totalorder %s2065_s27, 4   ;;  %s2288_s7 = smov %s1840_s8 }
 0x2dd   : > { %s2289_s8 = smov %s1844_s9  ;;  %s2290_s9 = smov %s2081_s23 }
 0x2de   : > { %s2291_s10 = smov %s2065_s27  ;;  %27 = sbr.rel (!%p25_p2) target bundleno = 19 (0x13), region = 101 }
 0x2e5   :  { %1133 = vsyncpa [#allocation5], 1 }
 0x2e6   :  { %1135 = vsyncpa [#allocation5 + $0x1], 1 }
 0x2e7   :  { %1136 = vsyncpa [#allocation8], 1 }
 0x2e8   :  { %1137 = vsyncpa [#allocation11], 1 }
 0x2e9   :  { %1138 = vsyncpa [#allocation6], 1 }
 0x2ea   :  { %1140 = vsyncpa [#allocation6 + $0x1], 1 }

</bundles_post_ra>
